<compile_context>
chip_gen: v6e
topology: v6e:2x2x1
jax: 0.10.0
libtpu: 0.0.40
codegen_flags: <defaults>
</compile_context>

<pallas_src>
import jax
import jax.numpy as jnp
from jax.experimental import pallas as pl
from jax.experimental.pallas import tpu as pltpu


def _channel_attn_kernel(x_ref,
                         w1m_ref, b1m_ref, w2m_ref, b2m_ref,
                         w1a_ref, b1a_ref, w2a_ref, b2a_ref,
                         o_ref):
    x = x_ref[...]                               # (TB, C, L) f32 in VMEM
    max_in = jnp.max(x, axis=-1)                 # (TB, C)  AdaptiveMaxPool1d(1)
    avg_in = jnp.mean(x, axis=-1)                # (TB, C)  AdaptiveAvgPool1d(1)

    def mlp(v, w1, b1, w2, b2):
        h = jnp.dot(v, w1, preferred_element_type=jnp.float32) + b1
        h = jnp.maximum(h, 0.0)                  # ReLU
        o = jnp.dot(h, w2, preferred_element_type=jnp.float32) + b2
        return jax.nn.sigmoid(o)                 # Sigmoid (EUP)

    w_max = mlp(max_in, w1m_ref[...], b1m_ref[...], w2m_ref[...], b2m_ref[...])
    w_avg = mlp(avg_in, w1a_ref[...], b1a_ref[...], w2a_ref[...], b2a_ref[...])

    w = w_max + w_avg                            # (TB, C)
    # softmax over channels (dim=-1); exact division to hold 1e-5 tolerance.
    w = w - jnp.max(w, axis=-1, keepdims=True)
    e = jnp.exp(w)
    w = e / jnp.sum(e, axis=-1, keepdims=True)

    # Weighted channel sum (replaces the per-batch M=1 bmm):
    # (TB, C, 1) * (TB, C, L) summed over C -> (TB, L).  Pure VPU+XLU work on
    # the x tile already resident in VMEM.
    out = jnp.sum(w[:, :, None] * x, axis=1)
    o_ref[...] = out.astype(o_ref.dtype)


def _pick_tb(B, C, L, itemsize=4, x_dbuf_budget=16 << 20):
    """Pick the batch tile TB.

    Constraints: TB divides B; the (TB, L) output block is layout-legal
    (TB % 8 == 0 or TB == B); the double-buffered x block fits a conservative
    VMEM budget (headroom for v7x's 64 MiB VMEM); prefer >= 2 grid steps
    (megacore on v7x), and within that prefer the largest TB.
    """
    def layout_ok(tb):
        return tb == B or tb % 8 == 0

    def fits(tb):
        return 2 * tb * C * L * itemsize <= x_dbuf_budget

    legal = [tb for tb in range(1, B + 1) if B % tb == 0 and layout_ok(tb)]
    candidates = [tb for tb in legal if fits(tb)]
    if not candidates:
        # Nothing fits the soft budget: take the smallest layout-legal tile
        # and rely on the explicit vmem_limit below.
        return min(legal) if legal else B
    multi_step = [tb for tb in candidates if B // tb >= 2]
    pool = multi_step if multi_step else candidates
    return max(pool)


def channel_attention(x, params, tb=None):
    """x: (B, C, L) float32. params: dict of MLP weights in (in, out) layout.

    Returns (B, 1, L), matching the PyTorch module's output shape.
    """
    B, C, L = x.shape
    H = params["w1m"].shape[1]

    if tb is None:
        tb = _pick_tb(B, C, L)
    assert B % tb == 0, (B, tb)
    grid = (B // tb,)

    # Weights/biases: full-array blocks, constant index_map -> fetched once.
    full = lambda shape: pl.BlockSpec(shape, lambda b: tuple(0 for _ in shape))

    grid_spec = pltpu.PrefetchScalarGridSpec(
        num_scalar_prefetch=0,
        grid=grid,
        in_specs=[
            pl.BlockSpec((tb, C, L), lambda b: (b, 0, 0)),
            full((C, H)), full((1, H)), full((H, C)), full((1, C)),
            full((C, H)), full((1, H)), full((H, C)), full((1, C)),
        ],
        # Lane-dense (and sublane-dense for TB >= 8) output blocks.
        out_specs=pl.BlockSpec((tb, L), lambda b: (b, 0)),
    )

    # Explicit VMEM budget: double-buffered x + output blocks + both MLPs'
    # weights, clamped so it stays inside v7x's 64 MiB physical VMEM.
    x_blk_bytes = tb * C * L * 4
    o_blk_bytes = tb * L * 4
    w_bytes = 2 * (C * H + H + H * C + C) * 4
    vmem_needed = 2 * (x_blk_bytes + o_blk_bytes + w_bytes) + (2 << 20)
    vmem_limit = int(min(max(vmem_needed, 32 << 20), 56 << 20))

    out = pl.pallas_call(
        _channel_attn_kernel,
        out_shape=jax.ShapeDtypeStruct((B, L), jnp.float32),
        grid_spec=grid_spec,
        compiler_params=pltpu.CompilerParams(
            dimension_semantics=("parallel",),
            vmem_limit_bytes=vmem_limit),
    )(x,
      params["w1m"], params["b1m"], params["w2m"], params["b2m"],
      params["w1a"], params["b1a"], params["w2a"], params["b2a"])

    return out[:, None, :]                       # (B, 1, L) like torch.bmm


def channel_attention_ref(x, params):
    """Pure-JAX reference mirroring the PyTorch forward exactly."""
    max_in = jnp.max(x, axis=-1)
    avg_in = jnp.mean(x, axis=-1)

    def mlp(v, w1, b1, w2, b2):
        h = jnp.maximum(v @ w1 + b1[0], 0.0)
        return jax.nn.sigmoid(h @ w2 + b2[0])

    w = (mlp(max_in, params["w1m"], params["b1m"], params["w2m"], params["b2m"])
         + mlp(avg_in, params["w1a"], params["b1a"], params["w2a"], params["b2a"]))
    w = jax.nn.softmax(w, axis=-1)
    return jnp.einsum("bc,bcl->bl", w, x)[:, None, :]


if __name__ == "__main__":
    B, C, L = 2, 8, 16
    r = 0.5
    H = int(C * r)

    key = jax.random.PRNGKey(0)
    ks = jax.random.split(key, 9)
    x = jax.random.normal(ks[0], (B, C, L), dtype=jnp.float32)

    # Deterministic synthetic parameters (Linear weights stored as (in, out)).
    params = {
        "w1m": 0.3 * jax.random.normal(ks[1], (C, H), dtype=jnp.float32),
        "b1m": 0.1 * jax.random.normal(ks[2], (1, H), dtype=jnp.float32),
        "w2m": 0.3 * jax.random.normal(ks[3], (H, C), dtype=jnp.float32),
        "b2m": 0.1 * jax.random.normal(ks[4], (1, C), dtype=jnp.float32),
        "w1a": 0.3 * jax.random.normal(ks[5], (C, H), dtype=jnp.float32),
        "b1a": 0.1 * jax.random.normal(ks[6], (1, H), dtype=jnp.float32),
        "w2a": 0.3 * jax.random.normal(ks[7], (H, C), dtype=jnp.float32),
        "b2a": 0.1 * jax.random.normal(ks[8], (1, C), dtype=jnp.float32),
    }

    out = channel_attention(x, params)
    out = jax.block_until_ready(out)

    ref = channel_attention_ref(x, params)
    assert out.shape == (B, 1, L), out.shape
    assert jnp.allclose(out, ref, atol=1e-5, rtol=1e-5), \
        f"max abs err {jnp.max(jnp.abs(out - ref))}"

    print("KERNEL_OK")
</pallas_src>

<mosaic_0001>
module attributes {stable_mosaic.version = 11 : i64} {
  func.func @_channel_attn_kernel(%arg0: i32, %arg1: memref<2x8x16xf32, #tpu.memory_space<vmem>>, %arg2: memref<8x4xf32, #tpu.memory_space<vmem>>, %arg3: memref<1x4xf32, #tpu.memory_space<vmem>>, %arg4: memref<4x8xf32, #tpu.memory_space<vmem>>, %arg5: memref<1x8xf32, #tpu.memory_space<vmem>>, %arg6: memref<8x4xf32, #tpu.memory_space<vmem>>, %arg7: memref<1x4xf32, #tpu.memory_space<vmem>>, %arg8: memref<4x8xf32, #tpu.memory_space<vmem>>, %arg9: memref<1x8xf32, #tpu.memory_space<vmem>>, %arg10: memref<2x16xf32, #tpu.memory_space<vmem>>) attributes {dimension_semantics = [#tpu.dimension_semantics<parallel>], iteration_bounds = array<i64: 1>, scalar_prefetch = 0 : i64, scratch_operands = 0 : i64, tpu.core_type = #tpu.core_type<tc>, window_params = [{transform_indices = @transform_0, window_bounds = array<i64: 2, 8, 16>}, {pipeline_mode = #tpu.pipeline_mode<synchronous>, transform_indices = @transform_1, window_bounds = array<i64: 8, 4>}, {pipeline_mode = #tpu.pipeline_mode<synchronous>, transform_indices = @transform_2, window_bounds = array<i64: 1, 4>}, {pipeline_mode = #tpu.pipeline_mode<synchronous>, transform_indices = @transform_3, window_bounds = array<i64: 4, 8>}, {pipeline_mode = #tpu.pipeline_mode<synchronous>, transform_indices = @transform_4, window_bounds = array<i64: 1, 8>}, {pipeline_mode = #tpu.pipeline_mode<synchronous>, transform_indices = @transform_5, window_bounds = array<i64: 8, 4>}, {pipeline_mode = #tpu.pipeline_mode<synchronous>, transform_indices = @transform_6, window_bounds = array<i64: 1, 4>}, {pipeline_mode = #tpu.pipeline_mode<synchronous>, transform_indices = @transform_7, window_bounds = array<i64: 4, 8>}, {pipeline_mode = #tpu.pipeline_mode<synchronous>, transform_indices = @transform_8, window_bounds = array<i64: 1, 8>}, {transform_indices = @transform_9, window_bounds = array<i64: 2, 16>}]} {
    %c0 = arith.constant 0 : index
    %c0_0 = arith.constant 0 : index
    %c0_1 = arith.constant 0 : index
    %0 = vector.load %arg1[%c0, %c0_0, %c0_1] : memref<2x8x16xf32, #tpu.memory_space<vmem>>, vector<2x8x16xf32>
    %cst = arith.constant dense<0xFF800000> : vector<2x8xf32>
    %1 = vector.multi_reduction <maximumf>, %0, %cst [2] : vector<2x8x16xf32> to vector<2x8xf32>
    %cst_2 = arith.constant dense<0.000000e+00> : vector<2x8xf32>
    %2 = vector.multi_reduction <add>, %0, %cst_2 [2] : vector<2x8x16xf32> to vector<2x8xf32>
    %cst_3 = arith.constant 1.600000e+01 : f32
    %3 = vector.broadcast %cst_3 : f32 to vector<2x8xf32>
    %4 = arith.divf %2, %3 : vector<2x8xf32>
    %c0_4 = arith.constant 0 : index
    %c0_5 = arith.constant 0 : index
    %5 = vector.load %arg2[%c0_4, %c0_5] : memref<8x4xf32, #tpu.memory_space<vmem>>, vector<8x4xf32>
    %c0_6 = arith.constant 0 : index
    %c0_7 = arith.constant 0 : index
    %6 = vector.load %arg3[%c0_6, %c0_7] : memref<1x4xf32, #tpu.memory_space<vmem>>, vector<1x4xf32>
    %c0_8 = arith.constant 0 : index
    %c0_9 = arith.constant 0 : index
    %7 = vector.load %arg4[%c0_8, %c0_9] : memref<4x8xf32, #tpu.memory_space<vmem>>, vector<4x8xf32>
    %c0_10 = arith.constant 0 : index
    %c0_11 = arith.constant 0 : index
    %8 = vector.load %arg5[%c0_10, %c0_11] : memref<1x8xf32, #tpu.memory_space<vmem>>, vector<1x8xf32>
    %cst_12 = arith.constant dense<0.000000e+00> : vector<2x4xf32>
    %9 = tpu.matmul %1, %5, %cst_12 {dimension_numbers = #tpu.dot_dimension_numbers<[1], [0], [0], [1], [0, 0, 1, 1], [], []>} : vector<2x8xf32>, vector<8x4xf32>, vector<2x4xf32> -> vector<2x4xf32>
    %10 = vector.broadcast %6 : vector<1x4xf32> to vector<2x4xf32>
    %11 = arith.addf %9, %10 : vector<2x4xf32>
    %cst_13 = arith.constant 0.000000e+00 : f32
    %12 = vector.broadcast %cst_13 : f32 to vector<2x4xf32>
    %13 = arith.maximumf %11, %12 : vector<2x4xf32>
    %cst_14 = arith.constant dense<0.000000e+00> : vector<2x8xf32>
    %14 = tpu.matmul %13, %7, %cst_14 {dimension_numbers = #tpu.dot_dimension_numbers<[1], [0], [0], [1], [0, 0, 1, 1], [], []>} : vector<2x4xf32>, vector<4x8xf32>, vector<2x8xf32> -> vector<2x8xf32>
    %15 = vector.broadcast %8 : vector<1x8xf32> to vector<2x8xf32>
    %16 = arith.addf %14, %15 : vector<2x8xf32>
    %17 = arith.negf %16 : vector<2x8xf32>
    %18 = math.exp %17 : vector<2x8xf32>
    %cst_15 = arith.constant 1.000000e+00 : f32
    %19 = vector.broadcast %cst_15 : f32 to vector<2x8xf32>
    %20 = arith.addf %19, %18 : vector<2x8xf32>
    %21 = arith.divf %19, %20 : vector<2x8xf32>
    %c0_16 = arith.constant 0 : index
    %c0_17 = arith.constant 0 : index
    %22 = vector.load %arg6[%c0_16, %c0_17] : memref<8x4xf32, #tpu.memory_space<vmem>>, vector<8x4xf32>
    %c0_18 = arith.constant 0 : index
    %c0_19 = arith.constant 0 : index
    %23 = vector.load %arg7[%c0_18, %c0_19] : memref<1x4xf32, #tpu.memory_space<vmem>>, vector<1x4xf32>
    %c0_20 = arith.constant 0 : index
    %c0_21 = arith.constant 0 : index
    %24 = vector.load %arg8[%c0_20, %c0_21] : memref<4x8xf32, #tpu.memory_space<vmem>>, vector<4x8xf32>
    %c0_22 = arith.constant 0 : index
    %c0_23 = arith.constant 0 : index
    %25 = vector.load %arg9[%c0_22, %c0_23] : memref<1x8xf32, #tpu.memory_space<vmem>>, vector<1x8xf32>
    %cst_24 = arith.constant dense<0.000000e+00> : vector<2x4xf32>
    %26 = tpu.matmul %4, %22, %cst_24 {dimension_numbers = #tpu.dot_dimension_numbers<[1], [0], [0], [1], [0, 0, 1, 1], [], []>} : vector<2x8xf32>, vector<8x4xf32>, vector<2x4xf32> -> vector<2x4xf32>
    %27 = vector.broadcast %23 : vector<1x4xf32> to vector<2x4xf32>
    %28 = arith.addf %26, %27 : vector<2x4xf32>
    %cst_25 = arith.constant 0.000000e+00 : f32
    %29 = vector.broadcast %cst_25 : f32 to vector<2x4xf32>
    %30 = arith.maximumf %28, %29 : vector<2x4xf32>
    %cst_26 = arith.constant dense<0.000000e+00> : vector<2x8xf32>
    %31 = tpu.matmul %30, %24, %cst_26 {dimension_numbers = #tpu.dot_dimension_numbers<[1], [0], [0], [1], [0, 0, 1, 1], [], []>} : vector<2x4xf32>, vector<4x8xf32>, vector<2x8xf32> -> vector<2x8xf32>
    %32 = vector.broadcast %25 : vector<1x8xf32> to vector<2x8xf32>
    %33 = arith.addf %31, %32 : vector<2x8xf32>
    %34 = arith.negf %33 : vector<2x8xf32>
    %35 = math.exp %34 : vector<2x8xf32>
    %cst_27 = arith.constant 1.000000e+00 : f32
    %36 = vector.broadcast %cst_27 : f32 to vector<2x8xf32>
    %37 = arith.addf %36, %35 : vector<2x8xf32>
    %38 = arith.divf %36, %37 : vector<2x8xf32>
    %39 = arith.addf %21, %38 : vector<2x8xf32>
    %cst_28 = arith.constant dense<0xFF800000> : vector<2xf32>
    %40 = vector.multi_reduction <maximumf>, %39, %cst_28 [1] : vector<2x8xf32> to vector<2xf32>
    %41 = vector.shape_cast %40 : vector<2xf32> to vector<2x1xf32>
    %42 = vector.broadcast %41 : vector<2x1xf32> to vector<2x8xf32>
    %43 = arith.subf %39, %42 : vector<2x8xf32>
    %44 = math.exp %43 : vector<2x8xf32>
    %cst_29 = arith.constant dense<0.000000e+00> : vector<2xf32>
    %45 = vector.multi_reduction <add>, %44, %cst_29 [1] : vector<2x8xf32> to vector<2xf32>
    %46 = vector.shape_cast %45 : vector<2xf32> to vector<2x1xf32>
    %47 = vector.broadcast %46 : vector<2x1xf32> to vector<2x8xf32>
    %48 = arith.divf %44, %47 : vector<2x8xf32>
    %49 = vector.shape_cast %48 : vector<2x8xf32> to vector<2x8x1xf32>
    %50 = vector.broadcast %49 : vector<2x8x1xf32> to vector<2x8x16xf32>
    %51 = arith.mulf %50, %0 : vector<2x8x16xf32>
    %cst_30 = arith.constant dense<0.000000e+00> : vector<2x16xf32>
    %52 = vector.multi_reduction <add>, %51, %cst_30 [1] : vector<2x8x16xf32> to vector<2x16xf32>
    %c0_31 = arith.constant 0 : index
    %c0_32 = arith.constant 0 : index
    %53 = vector.load %arg10[%c0_31, %c0_32] : memref<2x16xf32, #tpu.memory_space<vmem>>, vector<2x16xf32>
    tpu.vector_store %arg10[%c0_31, %c0_32], %52 {strides = array<i32>} : memref<2x16xf32, #tpu.memory_space<vmem>>, vector<2x16xf32>,
    return
  }
  func.func @transform_0(%arg0: i32) -> (i32, i32, i32) {
    %c0_i32 = arith.constant 0 : i32
    %c0_i32_0 = arith.constant 0 : i32
    %c0_i32_1 = arith.constant 0 : i32
    return %arg0, %c0_i32, %c0_i32_0 : i32, i32, i32
  }
  func.func @transform_1(%arg0: i32) -> (i32, i32) {
    %c0_i32 = arith.constant 0 : i32
    %c0_i32_0 = arith.constant 0 : i32
    %c0_i32_1 = arith.constant 0 : i32
    return %c0_i32, %c0_i32_0 : i32, i32
  }
  func.func @transform_2(%arg0: i32) -> (i32, i32) {
    %c0_i32 = arith.constant 0 : i32
    %c0_i32_0 = arith.constant 0 : i32
    %c0_i32_1 = arith.constant 0 : i32
    return %c0_i32, %c0_i32_0 : i32, i32
  }
  func.func @transform_3(%arg0: i32) -> (i32, i32) {
    %c0_i32 = arith.constant 0 : i32
    %c0_i32_0 = arith.constant 0 : i32
    %c0_i32_1 = arith.constant 0 : i32
    return %c0_i32, %c0_i32_0 : i32, i32
  }
  func.func @transform_4(%arg0: i32) -> (i32, i32) {
    %c0_i32 = arith.constant 0 : i32
    %c0_i32_0 = arith.constant 0 : i32
    %c0_i32_1 = arith.constant 0 : i32
    return %c0_i32, %c0_i32_0 : i32, i32
  }
  func.func @transform_5(%arg0: i32) -> (i32, i32) {
    %c0_i32 = arith.constant 0 : i32
    %c0_i32_0 = arith.constant 0 : i32
    %c0_i32_1 = arith.constant 0 : i32
    return %c0_i32, %c0_i32_0 : i32, i32
  }
  func.func @transform_6(%arg0: i32) -> (i32, i32) {
    %c0_i32 = arith.constant 0 : i32
    %c0_i32_0 = arith.constant 0 : i32
    %c0_i32_1 = arith.constant 0 : i32
    return %c0_i32, %c0_i32_0 : i32, i32
  }
  func.func @transform_7(%arg0: i32) -> (i32, i32) {
    %c0_i32 = arith.constant 0 : i32
    %c0_i32_0 = arith.constant 0 : i32
    %c0_i32_1 = arith.constant 0 : i32
    return %c0_i32, %c0_i32_0 : i32, i32
  }
  func.func @transform_8(%arg0: i32) -> (i32, i32) {
    %c0_i32 = arith.constant 0 : i32
    %c0_i32_0 = arith.constant 0 : i32
    %c0_i32_1 = arith.constant 0 : i32
    return %c0_i32, %c0_i32_0 : i32, i32
  }
  func.func @transform_9(%arg0: i32) -> (i32, i32) {
    %c0_i32 = arith.constant 0 : i32
    %c0_i32_0 = arith.constant 0 : i32
    return %arg0, %c0_i32 : i32, i32
  }
}

</mosaic_0001>

<bundles_post_ra>
// kernel: tpu_custom_call.1
= control target key start
LH: loop header
LB: loop body
LE: loop exit
PB: predicated region body
PF: predicated region fallthrough
CT: control target
= control target key end

     0   :  { %vm35_vm0 = vcmask 130048   ;;  %s675_s0 = inlined_call_operand.vmem [shape: f32[2,8,16], index: 0, kind: input, shape index: {}]   ;;  %s676_s1 = inlined_call_operand.vmem [shape: f32[8,4], index: 1, kind: input, shape index: {}]   ;;  %s677_s2 = inlined_call_operand.vmem [shape: f32[1,4], index: 2, kind: input, shape index: {}]   ;;  %s678_s3 = inlined_call_operand.vmem [shape: f32[4,8], index: 3, kind: input, shape index: {}]   ;;  %s679_s4 = inlined_call_operand.vmem [shape: f32[1,8], index: 4, kind: input, shape index: {}]   ;;  %s680_s5 = inlined_call_operand.vmem [shape: f32[8,4], index: 5, kind: input, shape index: {}]   ;;  %s681_s6 = inlined_call_operand.vmem [shape: f32[1,4], index: 6, kind: input, shape index: {}]   ;;  %s682_s7 = inlined_call_operand.vmem [shape: f32[4,8], index: 7, kind: input, shape index: {}]   ;;  %s683_s8 = inlined_call_operand.vmem [shape: f32[1,8], index: 8, kind: input, shape index: {}]   ;;  %s684_s9 = inlined_call_operand.hbm [shape: f32[2,16], index: 9, kind: output, shape index: {}]  }
   0x1   :  { %v617_v0 = vld [vmem:[%s675_s0] sm:$0xff]  ;;  %v622_v1 = vld [vmem:[%s675_s0 + $0x8] sm:$0xff] }
   0x2   :  { %14 = vsyncpa [#allocation3], 0  ;;  %v42_v2 = vsel %vm35_vm0, %v617_v0, 0.0  ;;  %v36_v3 = vsel %vm35_vm0, %v617_v0, -inf  ;;  %v45_v4 = vsel %vm35_vm0, %v622_v1, 0.0  ;;  %v39_v5 = vsel %vm35_vm0, %v622_v1, -inf }
   0x3   :  { %43 = vadd.xlane.f32.xlu1 %v42_v2  ;;  %37 = vmax.xlane.f32.xlu0 %v36_v3  ;;  %v561_v6 = vmov 0.0   ;;  %v51_v7 = vld [vmem:[%s676_s1] sm:$0xff]  ;;  %vm562_vm1 = vmmov 0   ;;  %v63_v8 = vlaneseq  ;;  %vm73_vm2 = vcmask 1041409  }
   0x4   :  { %504 = vmatprep.subr.mxu0 %v561_v6  ;;  %509 = vmatprep.subr.mxu1 %v561_v6  ;;  %vm75_vm3 = vcmask 64512   ;;  %v239_v20 = vld [vmem:[%s680_s5] sm:$0xff]  ;;  %vm159_vm4 = vcmask 1043456   ;;  %vm155_vm5 = vcmask 31744   ;;  %vm422_vm6 = vcmask 58368  }
   0x5   :  { %505 = vmatpush3.msra.mxu0 %v51_v7  ;;  %506 = vmatprep.mubr.msk.f32.mxu0 %vm562_vm1, %v561_v6  ;;  %v64_v9 = vand.u32 127, %v63_v8  ;;  %v637_v10 = vshrl.u32 %v63_v8, 7  ;;  %v53_v25 = vld [vmem:[%s678_s3] sm:$0xf]  ;;  %vm468_vm7 = vcmask 123904  }
   0x6   :  { %514 = vmatprep.subr.mxu0 %v561_v6  ;;  %511 = vmatprep.mubr.msk.f32.mxu1 %vm562_vm1, %v561_v6  ;;  %v484_v26 = vld [vmem:[%s677_s2] ss:$0 sm:$0xff] }
   0x7   :  { %46 = vadd.xlane.f32.xlu1 %v45_v4  ;;  %40 = vmax.xlane.f32.xlu0 %v39_v5  ;;  %v67_v13 = vsub.s32 %v64_v9, %v637_v10  ;;  %v490_v30 = vld [vmem:[%s681_s6] ss:$0 sm:$0xff]  ;;  %v443_v61 = vsub.s32 1, %v637_v10  ;;  %v436_v62 = vsub.s32 0, %v637_v10 }
   0x8   :  { %510 = vmatpush3.msk.msra.mxu1 %vm159_vm4, %v53_v25  ;;  %v241_v32 = vld [vmem:[%s682_s7] sm:$0xf] }
   0x9   :  { %519 = vmatprep.subr.mxu1 %v561_v6  ;;  %v486_v37 = vld [vmem:[%s679_s4] ss:$0 sm:$0xff]  ;;  %s563_s4 = smov [#allocation2]  }
   0xa   :  { %v492_v41 = vld [vmem:[%s683_s8] ss:$0 sm:$0xff]  ;;  %s476_s7 = sshll.u32 %s563_s4, 4  ;;  %s477_s7 = int_to_ptr.vmem [resolvable:$true] %s476_s7 }
   0xb   :  { %s539_s8 = scalar_lea.vmem %s477_s7, 32  ;;  %p544_p1 = scmp.lt.s32.totalorder %s477_s7, %s477_s7 }
   0xc   :  { %p540_p0 = scmp.ne.s32.totalorder %s477_s7, %s539_s8  ;;  %p545_p2 = scmp.lt.s32.totalorder %s539_s8, %s539_s8 }
   0xe   :  { %p546_p3 = por %p545_p2, %p544_p1 }
  0x10   :  { %p547_p4 = pnand %p546_p3, %p540_p0 }
  0x8c   :  { %v44_v11 = vpop.xlane.xlu1 %43  ;;  %v38_v12 = vpop.xlane.xlu0 %37 }
  0x8d   :  { %v49_v16 = vmul.f32 0.0625, %v44_v11  ;;  %v68_v17 = vrot.slane %v38_v12, %v67_v13 }
  0x8f   :  { %v254_v23 = vrot.slane %v49_v16, %v67_v13 }
  0x90   :  { %v47_v14 = vpop.xlane.xlu1 %46  ;;  %v41_v15 = vpop.xlane.xlu0 %40 }
  0x91   :  { %v50_v18 = vmul.f32 0.0625, %v47_v14  ;;  %v72_v19 = vrot.slane %v41_v15, %v67_v13 }
  0x93   :  { %v258_v21 = vrot.slane %v50_v18, %v67_v13  ;;  %v74_v22 = vsel %vm73_vm2, %v72_v19, %v68_v17 }
  0x94   :  { %507 = vmatmul.mubr.msk.f32.vlgmr.msra.gmra.mxu0 %vm75_vm3, %v74_v22 }
  0x95   :  { %515 = vmatpush3.msra.mxu0 %v239_v20  ;;  %516 = vmatprep.mubr.msk.f32.mxu0 %vm562_vm1, %v561_v6  ;;  %v259_v24 = vsel %vm73_vm2, %v258_v21, %v254_v23 }
  0x98   :  { %517 = vmatmul.mubr.msk.f32.vlgmr.msra.gmra.mxu0 %vm75_vm3, %v259_v24 }
 0x154   :  { %v144_v27 = vpop.f32.mrf.mxu0 }
 0x155   :  { %v145_v28 = vadd.f32 %v484_v26, %v144_v27 }
 0x156   :  { %v508_v29 = vpop.f32.mrf.mxu0 }
 0x157   :  { %v148_v31 = vmax.f32 %v145_v28, 0.0 }
 0x158   :  { %v328_v33 = vpop.f32.mrf.mxu0 }
 0x159   :  { %v329_v34 = vadd.f32 %v490_v30, %v328_v33  ;;  %512 = vmatmul.mubr.msk.f32.vlgmr.msra.gmra.mxu1 %vm155_vm5, %v148_v31 }
 0x15a   :  { %520 = vmatpush3.msk.msra.mxu1 %vm159_vm4, %v241_v32  ;;  %v518_v35 = vpop.f32.mrf.mxu0  ;;  %521 = vmatprep.mubr.msk.f32.mxu1 %vm562_vm1, %v561_v6 }
 0x15b   :  { %v332_v36 = vmax.f32 %v329_v34, 0.0 }
 0x15d   :  { %522 = vmatmul.mubr.msk.f32.vlgmr.msra.gmra.mxu1 %vm155_vm5, %v332_v36 }
 0x219   :  { %v229_v38 = vpop.f32.mrf.mxu1 }
 0x21a   :  { %v230_v39 = vadd.f32 %v486_v37, %v229_v38 }
 0x21b   :  { %v513_v40 = vpop.f32.mrf.mxu1 }
 0x21c   :  { %v489_v42 = vmul.f32 -1.442695, %v230_v39 }
 0x21d   :  { %v411_v43 = vpop.f32.mrf.mxu1 }
 0x21e   :  { %527 = vpow2.f32 %v489_v42  ;;  %v412_v44 = vadd.f32 %v492_v41, %v411_v43 }
 0x21f   :  { %v523_v45 = vpop.f32.mrf.mxu1 }
 0x220   :  { %v495_v46 = vmul.f32 -1.442695, %v412_v44 }
 0x222   :  { %529 = vpow2.f32 %v495_v46 }
 0x22b   :  { %v528_v47 = vpop.eup %527 }
 0x22c   :  { %v236_v48 = vadd.f32 1.0, %v528_v47 }
 0x22e   :  { %531 = vrcp.f32 %v236_v48 }
 0x22f   :  { %v530_v49 = vpop.eup %529 }
 0x230   :  { %v418_v50 = vadd.f32 1.0, %v530_v49 }
 0x232   :  { %533 = vrcp.f32 %v418_v50 }
 0x23b   :  { %v532_v51 = vpop.eup %531 }
 0x23f   :  { %v534_v52 = vpop.eup %533 }
 0x240   :  { %v421_v53 = vadd.f32 %v534_v52, %v532_v51 }
 0x242   :  { %v423_v54 = vsel %vm422_vm6, %v421_v53, -inf }
 0x243   :  { %424 = vmax.xlane.f32.xlu0 %v423_v54 }
 0x2cc   :  { %v425_v55 = vpop.xlane.xlu0 %424 }
 0x2cd   :  { %v426_v56 = vsub.f32 %v421_v53, %v425_v55 }
 0x2cf   :  { %v427_v57 = vmul.f32 1.442695, %v426_v56 }
 0x2d1   :  { %535 = vpow2.f32 %v427_v57 }
 0x2de   :  { %v536_v58 = vpop.eup %535 }
 0x2df   :  { %v429_v59 = vsel %vm422_vm6, %v536_v58, 0.0 }
 0x2e0   :  { %430 = vadd.xlane.f32.xlu1 %v429_v59 }
 0x369   :  { %v431_v60 = vpop.xlane.xlu1 %430 }
 0x36a   :  { %537 = vrcp.f32 %v431_v60 }
 0x377   :  { %v538_v63 = vpop.eup %537 }
 0x378   :  { %v433_v2 = vmul.f32 %v538_v63, %v536_v58 }
 0x37a   :  { %v444_v3 = vrot.slane %v433_v2, %v443_v61  ;;  %v437_v4 = vrot.slane %v433_v2, %v436_v62 }
 0x37c   :  { %446 = vbcast.lane.b32.xlu1 %v444_v3, 256  ;;  %439 = vbcast.lane.b32.xlu0 %v437_v4, 256 }
 0x3ee   :  { %v447_v5 = vpop.permute.xlu1 %446  ;;  %v440_v6 = vpop.permute.xlu0 %439 }
 0x3ef   :  { %v449_v7 = vmul.f32 %v447_v5, %v622_v1  ;;  %v448_v8 = vmul.f32 %v440_v6, %v617_v0 }
 0x3f1   :  { %v457_v9 = vsel %vm35_vm0, %v449_v7, 0.0  ;;  %v450_v11 = vsel %vm35_vm0, %v448_v8, 0.0 }
 0x3f2   :  { %v458_v12 = vrot.slane %v457_v9, 4  ;;  %v451_v13 = vrot.slane %v450_v11, 4 }
 0x3f4   :  { %v459_v14 = vadd.f32 %v458_v12, %v457_v9  ;;  %v452_v10 = vadd.f32 %v451_v13, %v450_v11 }
 0x3f6   :  { %v460_v15 = vrot.slane %v459_v14, 2  ;;  %v453_v16 = vrot.slane %v452_v10, 2 }
 0x3f8   :  { %v461_v17 = vadd.f32 %v460_v15, %v459_v14  ;;  %v454_v18 = vadd.f32 %v453_v16, %v452_v10 }
 0x3fa   :  { %v462_v19 = vrot.slane %v461_v17, 1  ;;  %v455_v20 = vrot.slane %v454_v18, 1 }
 0x3fc   :  { %v456_v21 = vadd.f32 %v455_v20, %v454_v18  ;;  %v463_v1 = vadd.f32 %v462_v19, %v461_v17 }
 0x3fe   :  { %v466_v0 = vsel %vm73_vm2, %v463_v1, %v456_v21 }
 0x3ff   :  { %469 = vst.msk [vmem:[#allocation2] sm:$0x3] %vm468_vm7, %v466_v0 }
 0x400   :  { %550 = shalt.err (!%p547_p4)
}
 0x401   :  { %479 = dma.vmem_to_hbm [thread:$0]  %s477_s7, 32, %s684_s9, [#allocation3]  }
 0x402   :  { %559 = dma.done.wait [#allocation3], 32  }
 0x403   :  { %560 = vsyncadd [#allocation3], 4294967264 }
 0x404   :  { %483 = vsyncpa [#allocation3], 1 }

</bundles_post_ra>
